<compile_context>
chip_gen: v6e
topology: v6e:2x2x1
jax: 0.10.0
libtpu: 0.0.40
codegen_flags: <defaults>
</compile_context>

<pallas_src>
from typing import NamedTuple, Optional

import jax
import jax.numpy as jnp
from jax.experimental import pallas as pl
from jax.experimental.pallas import tpu as pltpu


def _round_up(a, b):
    return (a + b - 1) // b * b


def _pick_tile(dim_padded, target, unit=128):
    """Largest multiple of `unit` that divides dim_padded and is <= target."""
    t = min(target, dim_padded)
    t = max((t // unit) * unit, unit)
    while dim_padded % t != 0:
        t -= unit
    return t


class ResBlockHydraParams(NamedTuple):
    wl: jax.Array                    # [Kp, Hp] compute dtype (torch weight.T, padded)
    bl: jax.Array                    # [1, Hp]  f32
    wr: Optional[jax.Array]          # [Kp, Hp] or None (Identity residual)
    br: Optional[jax.Array]          # [1, Hp]  or None
    in_features: int                 # true K = hidden * (num_condition + 1)
    hidden_size: int                 # true H


def prepare_resblock_hydra_params(w_lin, b_lin, w_res=None, b_res=None, *,
                                  compute_dtype=jnp.bfloat16):
    """One-time parameter prep (cast + pad).  w_lin/w_res are [K, H] (= torch W.T)."""
    K, H = w_lin.shape
    Kp, Hp = _round_up(K, 128), _round_up(H, 128)

    def pad_w(w):
        w = jnp.asarray(w).astype(compute_dtype)
        if (K, H) != (Kp, Hp):
            w = jnp.pad(w, ((0, Kp - K), (0, Hp - H)))
        return w

    def pad_b(b):
        b = jnp.asarray(b).astype(jnp.float32).reshape(1, H)
        if H != Hp:
            b = jnp.pad(b, ((0, 0), (0, Hp - H)))
        return b

    wl, bl = pad_w(w_lin), pad_b(b_lin)
    wr = pad_w(w_res) if w_res is not None else None
    br = pad_b(b_res) if b_res is not None else None
    return ResBlockHydraParams(wl=wl, bl=bl, wr=wr, br=br,
                               in_features=K, hidden_size=H)


# --------------------------------------------------------------------------- #
# Kernels
# --------------------------------------------------------------------------- #

def _resblock_identity_kernel(x_ref, wl_ref, bl_ref, o_ref, acc_ref, res_ref):
    """num_condition == 0: res_connection is Identity (K == H, tk == tn)."""
    j = pl.program_id(1)
    k = pl.program_id(2)

    @pl.when(k == 0)
    def _():
        acc_ref[...] = jnp.zeros_like(acc_ref)

    x = x_ref[...]
    acc_ref[...] += jnp.dot(x, wl_ref[...], preferred_element_type=jnp.float32)

    # The x tile at k == j is exactly the residual for output tile (i, j).
    @pl.when(k == j)
    def _():
        res_ref[...] = x.astype(jnp.float32)

    @pl.when(k == pl.num_programs(2) - 1)
    def _():
        y = acc_ref[...] + bl_ref[...]
        o_ref[...] = (res_ref[...] + y * jax.nn.sigmoid(y)).astype(o_ref.dtype)


def _resblock_cond_kernel(x_ref, wl_ref, wr_ref, bl_ref, br_ref, o_ref,
                          accl_ref, accr_ref):
    """num_condition > 0: res_connection is its own Linear projection."""
    k = pl.program_id(2)

    @pl.when(k == 0)
    def _():
        accl_ref[...] = jnp.zeros_like(accl_ref)
        accr_ref[...] = jnp.zeros_like(accr_ref)

    x = x_ref[...]
    accl_ref[...] += jnp.dot(x, wl_ref[...], preferred_element_type=jnp.float32)
    accr_ref[...] += jnp.dot(x, wr_ref[...], preferred_element_type=jnp.float32)

    @pl.when(k == pl.num_programs(2) - 1)
    def _():
        y = accl_ref[...] + bl_ref[...]
        r = accr_ref[...] + br_ref[...]
        o_ref[...] = (r + y * jax.nn.sigmoid(y)).astype(o_ref.dtype)


# --------------------------------------------------------------------------- #
# Wrapper
# --------------------------------------------------------------------------- #

def resblock_hydra(x, params: ResBlockHydraParams, *,
                   tm=512, tn=512, tk=512, out_dtype=None,
                   vmem_limit_bytes=32 * 1024 * 1024):
    """ResBlock_Hydra forward.  x: [..., K] with K = params.in_features."""
    K, H = params.in_features, params.hidden_size
    Kp, Hp = params.wl.shape
    compute_dtype = params.wl.dtype
    identity_res = params.wr is None
    if identity_res:
        assert K == H, "Identity residual requires in_features == hidden_size"

    assert x.shape[-1] == K
    lead = x.shape[:-1]
    x2d = x.reshape(-1, K)
    M = x2d.shape[0]
    out_dtype = x.dtype if out_dtype is None else out_dtype

    # ---- tile selection -------------------------------------------------- #
    # Sublane granularity of the packed compute dtype (8 f32, 16 bf16, 32 int8).
    sub = max(8, 32 // jnp.dtype(compute_dtype).itemsize)
    tm = min(tm, _round_up(M, sub))
    Mp = _round_up(M, tm)
    grid_m = Mp // tm

    tn = _pick_tile(Hp, tn)
    # v7x: keep the "parallel" N axis at >= 2 tiles when M fills a single row
    # tile, so decode-sized calls still use both TensorCores.
    if grid_m == 1 and Hp // tn < 2 and Hp >= 256:
        tn = _pick_tile(Hp, max(128, Hp // 2))
    if identity_res:
        tk = tn                      # square tiles: residual stash at k == j
    else:
        tk = _pick_tile(Kp, tk)
    grid = (grid_m, Hp // tn, Kp // tk)

    # ---- x prep (skip pad/cast when already aligned) ---------------------- #
    xc = x2d if x2d.dtype == compute_dtype else x2d.astype(compute_dtype)
    if (M, K) != (Mp, Kp):
        xc = jnp.pad(xc, ((0, Mp - M), (0, Kp - K)))

    # ---- specs ------------------------------------------------------------ #
    x_spec = pl.BlockSpec((tm, tk), lambda i, j, k: (i, k))
    w_spec = pl.BlockSpec((tk, tn), lambda i, j, k: (k, j))
    b_spec = pl.BlockSpec((1, tn), lambda i, j, k: (0, j))
    o_spec = pl.BlockSpec((tm, tn), lambda i, j, k: (i, j))
    out_shape = jax.ShapeDtypeStruct((Mp, Hp), out_dtype)
    cparams = pltpu.CompilerParams(
        dimension_semantics=("parallel", "parallel", "arbitrary"),
        vmem_limit_bytes=vmem_limit_bytes)

    itm = jnp.dtype(compute_dtype).itemsize
    obytes = Mp * Hp * jnp.dtype(out_dtype).itemsize
    grid_n = grid[1]
    n_w = 1 if identity_res else 2
    cost = pl.CostEstimate(
        flops=2 * n_w * Mp * Kp * Hp,
        transcendentals=Mp * Hp,
        bytes_accessed=(grid_n * Mp * Kp * itm          # x re-read per N tile
                        + n_w * grid_m * Kp * Hp * itm  # weights re-read per M tile
                        + n_w * Hp * 4 + obytes))

    if identity_res:
        out = pl.pallas_call(
            _resblock_identity_kernel,
            out_shape=out_shape,
            grid_spec=pltpu.PrefetchScalarGridSpec(
                num_scalar_prefetch=0,
                grid=grid,
                in_specs=[x_spec, w_spec, b_spec],
                out_specs=o_spec,
                scratch_shapes=[pltpu.VMEM((tm, tn), jnp.float32),   # matmul acc
                                pltpu.VMEM((tm, tn), jnp.float32)]), # residual stash
            compiler_params=cparams,
            cost_estimate=cost,
        )(xc, params.wl, params.bl)
    else:
        w_spec_r = pl.BlockSpec((tk, tn), lambda i, j, k: (k, j))
        b_spec_r = pl.BlockSpec((1, tn), lambda i, j, k: (0, j))
        out = pl.pallas_call(
            _resblock_cond_kernel,
            out_shape=out_shape,
            grid_spec=pltpu.PrefetchScalarGridSpec(
                num_scalar_prefetch=0,
                grid=grid,
                in_specs=[x_spec, w_spec, w_spec_r, b_spec, b_spec_r],
                out_specs=o_spec,
                scratch_shapes=[pltpu.VMEM((tm, tn), jnp.float32),
                                pltpu.VMEM((tm, tn), jnp.float32)]),
            compiler_params=cparams,
            cost_estimate=cost,
        )(xc, params.wl, params.wr, params.bl, params.br)

    if (Mp, Hp) != (M, H):
        out = out[:M, :H]
    return out.reshape(*lead, H)


def resblock_hydra_from_weights(x, w_lin, b_lin, w_res=None, b_res=None, *,
                                compute_dtype=jnp.bfloat16, **kwargs):
    """Convenience one-shot path (prep + run).  Prefer prepare_* once + resblock_hydra."""
    params = prepare_resblock_hydra_params(w_lin, b_lin, w_res, b_res,
                                           compute_dtype=compute_dtype)
    return resblock_hydra(x, params, **kwargs)


# --------------------------------------------------------------------------- #
# References
# --------------------------------------------------------------------------- #

def _reference(x2d, w_lin, b_lin, w_res=None, b_res=None,
               compute_dtype=jnp.bfloat16):
    """Reference with the same bf16-operand / f32-accumulate contract."""
    xc = x2d.astype(compute_dtype)
    y = jnp.dot(xc, w_lin.astype(compute_dtype),
                preferred_element_type=jnp.float32) + b_lin
    silu = y * jax.nn.sigmoid(y)
    if w_res is None:
        res = xc.astype(jnp.float32)       # identity residual of the bf16 stream
    else:
        res = jnp.dot(xc, w_res.astype(compute_dtype),
                      preferred_element_type=jnp.float32) + b_res
    return res + silu


def _reference_f32(x2d, w_lin, b_lin, w_res=None, b_res=None):
    y = x2d @ w_lin + b_lin
    silu = y * jax.nn.sigmoid(y)
    res = x2d if w_res is None else x2d @ w_res + b_res
    return res + silu


if __name__ == "__main__":
    key = jax.random.PRNGKey(0)
    hidden = 32
    batch, seq = 2, 8
    M = batch * seq

    # ---------------- case 1: num_condition = 0 (Identity residual) -------- #
    K0 = hidden * 1
    k1, k2, key = jax.random.split(key, 3)
    x0 = jax.random.normal(k1, (batch, seq, K0), dtype=jnp.float32)
    # PyTorch init: linear.weight zero-initialized; bias ~ U(-1/sqrt(K), 1/sqrt(K)).
    w_lin0 = jnp.zeros((K0, hidden), dtype=jnp.float32)          # [K, H] (= W.T)
    bound0 = 1.0 / (K0 ** 0.5)
    b_lin0 = jax.random.uniform(k2, (hidden,), jnp.float32, -bound0, bound0)

    params0 = prepare_resblock_hydra_params(w_lin0, b_lin0)      # one-time prep
    out0 = jax.block_until_ready(resblock_hydra(x0, params0))
    assert out0.shape == (batch, seq, hidden)
    ref0 = _reference(x0.reshape(M, K0), w_lin0, b_lin0).reshape(batch, seq, hidden)
    ref0_f32 = _reference_f32(x0.reshape(M, K0), w_lin0, b_lin0).reshape(batch, seq, hidden)
    assert jnp.allclose(out0, ref0, atol=1e-4, rtol=1e-4)
    assert jnp.allclose(out0, ref0_f32, atol=5e-2, rtol=5e-2)

    # ---------------- case 2: num_condition = 1 (Linear residual) ---------- #
    num_condition = 1
    K1 = hidden * (num_condition + 1)
    k3, k4, k5, k6, key = jax.random.split(key, 5)
    x1 = jax.random.normal(k3, (batch, seq, K1), dtype=jnp.float32)
    w_lin1 = jnp.zeros((K1, hidden), dtype=jnp.float32)          # zero-init per module
    bound1 = 1.0 / (K1 ** 0.5)
    b_lin1 = jax.random.uniform(k4, (hidden,), jnp.float32, -bound1, bound1)
    w_res1 = jax.random.uniform(k5, (K1, hidden), jnp.float32, -bound1, bound1)
    b_res1 = jax.random.uniform(k6, (hidden,), jnp.float32, -bound1, bound1)

    params1 = prepare_resblock_hydra_params(w_lin1, b_lin1, w_res1, b_res1)
    out1 = jax.block_until_ready(resblock_hydra(x1, params1))
    assert out1.shape == (batch, seq, hidden)
    ref1 = _reference(x1.reshape(M, K1), w_lin1, b_lin1,
                      w_res1, b_res1).reshape(batch, seq, hidden)
    ref1_f32 = _reference_f32(x1.reshape(M, K1), w_lin1, b_lin1,
                              w_res1, b_res1).reshape(batch, seq, hidden)
    assert jnp.allclose(out1, ref1, atol=1e-4, rtol=1e-4)
    assert jnp.allclose(out1, ref1_f32, atol=5e-2, rtol=5e-2)

    # ---------------- case 3: bf16 output path (halved writeback) ---------- #
    out1_bf16 = jax.block_until_ready(
        resblock_hydra(x1, params1, out_dtype=jnp.bfloat16))
    assert out1_bf16.dtype == jnp.bfloat16
    assert jnp.allclose(out1_bf16.astype(jnp.float32), ref1, atol=5e-2, rtol=5e-2)

    print("KERNEL_OK")
</pallas_src>

<mosaic_0001>
module attributes {stable_mosaic.version = 11 : i64} {
  func.func @_resblock_identity_kernel(%arg0: i32, %arg1: i32, %arg2: i32, %arg3: memref<16x128xbf16, #tpu.memory_space<vmem>>, %arg4: memref<128x128xbf16, #tpu.memory_space<vmem>>, %arg5: memref<1x128xf32, #tpu.memory_space<vmem>>, %arg6: memref<16x128xf32, #tpu.memory_space<vmem>>, %arg7: memref<16x128xf32, #tpu.memory_space<vmem>>, %arg8: memref<16x128xf32, #tpu.memory_space<vmem>>) attributes {dimension_semantics = [#tpu.dimension_semantics<parallel>, #tpu.dimension_semantics<parallel>, #tpu.dimension_semantics<arbitrary>], iteration_bounds = array<i64: 1, 1, 1>, scalar_prefetch = 0 : i64, scratch_operands = 2 : i64, tpu.core_type = #tpu.core_type<tc>, window_params = [{transform_indices = @transform_0, window_bounds = array<i64: 16, 128>}, {transform_indices = @transform_1, window_bounds = array<i64: 128, 128>}, {transform_indices = @transform_2, window_bounds = array<i64: 1, 128>}, {transform_indices = @transform_3, window_bounds = array<i64: 16, 128>}]} {
    %c0_i32 = arith.constant 0 : i32
    %0 = arith.cmpi eq, %arg2, %c0_i32 : i32
    %1 = arith.extui %0 : i1 to i32
    %c0_i32_0 = arith.constant 0 : i32
    %2 = arith.cmpi ne, %1, %c0_i32_0 : i32
    scf.if %2 {
      %cst_11 = arith.constant 0.000000e+00 : f32
      %15 = vector.broadcast %cst_11 : f32 to vector<16x128xf32>
      %c0_12 = arith.constant 0 : index
      %c0_13 = arith.constant 0 : index
      %16 = vector.load %arg7[%c0_12, %c0_13] : memref<16x128xf32, #tpu.memory_space<vmem>>, vector<16x128xf32>
      tpu.vector_store %arg7[%c0_12, %c0_13], %15 {strides = array<i32>} : memref<16x128xf32, #tpu.memory_space<vmem>>, vector<16x128xf32>,
    } else {
    }
    %c0 = arith.constant 0 : index
    %c0_1 = arith.constant 0 : index
    %3 = vector.load %arg3[%c0, %c0_1] : memref<16x128xbf16, #tpu.memory_space<vmem>>, vector<16x128xbf16>
    %c0_2 = arith.constant 0 : index
    %c0_3 = arith.constant 0 : index
    %4 = vector.load %arg7[%c0_2, %c0_3] : memref<16x128xf32, #tpu.memory_space<vmem>>, vector<16x128xf32>
    %c0_4 = arith.constant 0 : index
    %c0_5 = arith.constant 0 : index
    %5 = vector.load %arg4[%c0_4, %c0_5] : memref<128x128xbf16, #tpu.memory_space<vmem>>, vector<128x128xbf16>
    %cst = arith.constant dense<0.000000e+00> : vector<16x128xf32>
    %6 = tpu.matmul %3, %5, %cst {dimension_numbers = #tpu.dot_dimension_numbers<[1], [0], [0], [1], [0, 0, 1, 1], [], []>} : vector<16x128xbf16>, vector<128x128xbf16>, vector<16x128xf32> -> vector<16x128xf32>
    %7 = arith.addf %4, %6 : vector<16x128xf32>
    %c0_6 = arith.constant 0 : index
    %c0_7 = arith.constant 0 : index
    %8 = vector.load %arg7[%c0_6, %c0_7] : memref<16x128xf32, #tpu.memory_space<vmem>>, vector<16x128xf32>
    tpu.vector_store %arg7[%c0_6, %c0_7], %7 {strides = array<i32>} : memref<16x128xf32, #tpu.memory_space<vmem>>, vector<16x128xf32>,
    %9 = arith.cmpi eq, %arg2, %arg1 : i32
    %10 = arith.extui %9 : i1 to i32
    %c0_i32_8 = arith.constant 0 : i32
    %11 = arith.cmpi ne, %10, %c0_i32_8 : i32
    scf.if %11 {
      %15 = arith.extf %3 : vector<16x128xbf16> to vector<16x128xf32>
      %c0_11 = arith.constant 0 : index
      %c0_12 = arith.constant 0 : index
      %16 = vector.load %arg8[%c0_11, %c0_12] : memref<16x128xf32, #tpu.memory_space<vmem>>, vector<16x128xf32>
      tpu.vector_store %arg8[%c0_11, %c0_12], %15 {strides = array<i32>} : memref<16x128xf32, #tpu.memory_space<vmem>>, vector<16x128xf32>,
    } else {
    }
    %c0_i32_9 = arith.constant 0 : i32
    %12 = arith.cmpi eq, %arg2, %c0_i32_9 : i32
    %13 = arith.extui %12 : i1 to i32
    %c0_i32_10 = arith.constant 0 : i32
    %14 = arith.cmpi ne, %13, %c0_i32_10 : i32
    scf.if %14 {
      %c0_11 = arith.constant 0 : index
      %c0_12 = arith.constant 0 : index
      %15 = vector.load %arg7[%c0_11, %c0_12] : memref<16x128xf32, #tpu.memory_space<vmem>>, vector<16x128xf32>
      %c0_13 = arith.constant 0 : index
      %c0_14 = arith.constant 0 : index
      %16 = vector.load %arg5[%c0_13, %c0_14] : memref<1x128xf32, #tpu.memory_space<vmem>>, vector<1x128xf32>
      %17 = vector.broadcast %16 : vector<1x128xf32> to vector<16x128xf32>
      %18 = arith.addf %15, %17 : vector<16x128xf32>
      %c0_15 = arith.constant 0 : index
      %c0_16 = arith.constant 0 : index
      %19 = vector.load %arg8[%c0_15, %c0_16] : memref<16x128xf32, #tpu.memory_space<vmem>>, vector<16x128xf32>
      %20 = arith.negf %18 : vector<16x128xf32>
      %21 = math.exp %20 : vector<16x128xf32>
      %cst_17 = arith.constant 1.000000e+00 : f32
      %22 = vector.broadcast %cst_17 : f32 to vector<16x128xf32>
      %23 = arith.addf %22, %21 : vector<16x128xf32>
      %24 = arith.divf %22, %23 : vector<16x128xf32>
      %25 = arith.mulf %18, %24 : vector<16x128xf32>
      %26 = arith.addf %19, %25 : vector<16x128xf32>
      %c0_18 = arith.constant 0 : index
      %c0_19 = arith.constant 0 : index
      %27 = vector.load %arg6[%c0_18, %c0_19] : memref<16x128xf32, #tpu.memory_space<vmem>>, vector<16x128xf32>
      tpu.vector_store %arg6[%c0_18, %c0_19], %26 {strides = array<i32>} : memref<16x128xf32, #tpu.memory_space<vmem>>, vector<16x128xf32>,
    } else {
    }
    return
  }
  func.func @transform_0(%arg0: i32, %arg1: i32, %arg2: i32) -> (i32, i32) {
    %c0_i32 = arith.constant 0 : i32
    return %arg0, %arg2 : i32, i32
  }
  func.func @transform_1(%arg0: i32, %arg1: i32, %arg2: i32) -> (i32, i32) {
    %c0_i32 = arith.constant 0 : i32
    return %arg2, %arg1 : i32, i32
  }
  func.func @transform_2(%arg0: i32, %arg1: i32, %arg2: i32) -> (i32, i32) {
    %c0_i32 = arith.constant 0 : i32
    %c0_i32_0 = arith.constant 0 : i32
    return %c0_i32, %arg1 : i32, i32
  }
  func.func @transform_3(%arg0: i32, %arg1: i32, %arg2: i32) -> (i32, i32) {
    %c0_i32 = arith.constant 0 : i32
    return %arg0, %arg1 : i32, i32
  }
}

</mosaic_0001>

<bundles_post_ra>
// kernel: tpu_custom_call.1
= control target key start
LH: loop header
LB: loop body
LE: loop exit
PB: predicated region body
PF: predicated region fallthrough
CT: control target
= control target key end

     0   :  { %8 = vsyncpa [#allocation5], 0  ;;  %s404_s0 = inlined_call_operand.hbm [shape: bf16[16,128], index: 0, kind: input, shape index: {}]   ;;  %s405_s1 = inlined_call_operand.hbm [shape: bf16[128,128], index: 1, kind: input, shape index: {}]   ;;  %s406_s2 = inlined_call_operand.vmem [shape: f32[1,128], index: 2, kind: input, shape index: {}]   ;;  %s407_s3 = inlined_call_operand.hbm [shape: f32[16,128], index: 3, kind: output, shape index: {}]  }
   0x1   :  { %9 = vsyncpa [#allocation8], 0 }
   0x2   :  { %10 = vsyncpa [#allocation6], 0  ;;  %s363_s12 = smov [#allocation4]  }
   0x3   :  { %s16_s13 = sshll.u32 %s363_s12, 4  ;;  %s17_s13 = int_to_ptr.vmem [resolvable:$true] %s16_s13 }
   0x4   :  { %s305_s14 = scalar_lea.vmem %s17_s13, 128  ;;  %p310_p1 = scmp.lt.s32.totalorder %s17_s13, %s17_s13 }
   0x5   :  { %p306_p0 = scmp.ne.s32.totalorder %s17_s13, %s305_s14  ;;  %p311_p2 = scmp.lt.s32.totalorder %s305_s14, %s305_s14 }
   0x7   :  { %p312_p3 = por %p311_p2, %p310_p1 }
   0x9   :  { %p313_p4 = pnand %p312_p3, %p306_p0 }
   0xb   :  { %316 = shalt.err (!%p313_p4)
}
   0xc   :  { %s364_s15 = smov 64   ;;  %s365_s16 = smov 4  }
   0xd   :  { %22 = dma.hbm_to_vmem [thread:$0]  %s404_s0, 128, %s17_s13, [#allocation5], %s364_s15, %s364_s15, %s365_s16  }
   0xe   :  { %s366_s19 = smov [#allocation7]  }
   0xf   :  { %s28_s20 = sshll.u32 %s366_s19, 4  ;;  %s29_s20 = int_to_ptr.vmem [resolvable:$true] %s28_s20 }
  0x10   :  { %s325_s21 = scalar_lea.vmem %s29_s20, 1024  ;;  %p330_p6 = scmp.lt.s32.totalorder %s29_s20, %s29_s20 }
  0x11   :  { %p326_p5 = scmp.ne.s32.totalorder %s29_s20, %s325_s21  ;;  %p331_p7 = scmp.lt.s32.totalorder %s325_s21, %s325_s21 }
  0x13   :  { %p332_p8 = por %p331_p7, %p330_p6 }
  0x15   :  { %p333_p9 = pnand %p332_p8, %p326_p5 }
  0x17   :  { %336 = shalt.err (!%p333_p9)
}
  0x18   :  { %34 = dma.hbm_to_vmem [thread:$0]  %s405_s1, 1024, %s29_s20, [#allocation8], %s364_s15, %s364_s15, %s365_s16  }
  0x19   :  { %357 = dma.done.wait [#allocation5], 128  }
  0x1a   :  { %358 = vsyncadd [#allocation5], 4294967168 }
  0x1b   :  { %359 = dma.done.wait [#allocation8], 1024  }
  0x1c   :  { %360 = vsyncadd [#allocation8], 4294966272  ;;  %v367_v0 = vmov 0.0   ;;  %vm368_vm0 = vmmov 0   ;;  %v279_v1 = vld [vmem:[#allocation7 + $0x38] sm:$0xff]   ;;  %v280_v2 = vld [vmem:[#allocation7 + $0x30] sm:$0xff]  }
  0x1d   :  { %250 = vmatprep.subr.bf16.mxu0 %v367_v0  ;;  %266 = vmatprep.mubr.msk.bf16.mxu0 %vm368_vm0, %v367_v0  ;;  %v281_v3 = vld [vmem:[#allocation7 + $0x28] sm:$0xff]   ;;  %v282_v4 = vld [vmem:[#allocation7 + $0x20] sm:$0xff]   ;;  %v283_v5 = vld [vmem:[#allocation7 + $0x18] sm:$0xff]  }
  0x1e   :  { %251 = vmatpush3.bf16.msra.mxu0 %v279_v1  ;;  %v284_v6 = vld [vmem:[#allocation7 + $0x10] sm:$0xff]   ;;  %v285_v7 = vld [vmem:[#allocation7 + $0x8] sm:$0xff]   ;;  %v286_v8 = vld [vmem:[#allocation7] sm:$0xff]  }
  0x1f   :  { %252 = vmatprep.subr.bf16.mxu0 %v367_v0  ;;  %v50_v9 = vld [vmem:[#allocation4] sm:$0xff]  }
  0x20   :  { %v238_v10 = vld [vmem:[%s406_s2] ss:$0 sm:$0xff]  ;;  %v173_v23 = vunpack.c.l.bf16 %v50_v9  ;;  %v174_v26 = vunpack.c.h.bf16 %v50_v9  ;;  %s369_s2 = smov [#allocation9]  }
  0x21   :  { %s216_s24 = sshll.u32 %s369_s2, 4  ;;  %s217_s24 = int_to_ptr.vmem [resolvable:$true] %s216_s24 }
  0x22   :  { %253 = vmatpush3.bf16.msra.mxu0 %v280_v2  ;;  %s337_s25 = scalar_lea.vmem %s217_s24, 256  ;;  %p342_p11 = scmp.lt.s32.totalorder %s217_s24, %s217_s24 }
  0x23   :  { %254 = vmatprep.subr.bf16.mxu0 %v367_v0  ;;  %p338_p10 = scmp.ne.s32.totalorder %s217_s24, %s337_s25  ;;  %p343_p12 = scmp.lt.s32.totalorder %s337_s25, %s337_s25 }
  0x25   :  { %p344_p13 = por %p343_p12, %p342_p11 }
  0x26   :  { %255 = vmatpush3.bf16.msra.mxu0 %v281_v3 }
  0x27   :  { %256 = vmatprep.subr.bf16.mxu0 %v367_v0  ;;  %p345_p0 = pnand %p344_p13, %p338_p10 }
  0x2a   :  { %257 = vmatpush3.bf16.msra.mxu0 %v282_v4 }
  0x2b   :  { %258 = vmatprep.subr.bf16.mxu0 %v367_v0 }
  0x2e   :  { %259 = vmatpush3.bf16.msra.mxu0 %v283_v5 }
  0x2f   :  { %260 = vmatprep.subr.bf16.mxu0 %v367_v0 }
  0x32   :  { %261 = vmatpush3.bf16.msra.mxu0 %v284_v6 }
  0x33   :  { %262 = vmatprep.subr.bf16.mxu0 %v367_v0 }
  0x36   :  { %263 = vmatpush3.bf16.msra.mxu0 %v285_v7 }
  0x37   :  { %264 = vmatprep.subr.bf16.mxu0 %v367_v0 }
  0x3a   :  { %265 = vmatpush3.bf16.msra.mxu0 %v286_v8 }
  0x3d   :  { %267 = vmatmul.mubr.bf16.vlgmr.msra.gmra.mxu0 %v50_v9 }
  0xfd   :  { %v158_v11 = vpop.f32.mrf.mxu0 }
  0xfe   :  { %v189_v12 = vadd.f32 %v238_v10, %v158_v11 }
  0xff   :  { %v268_v13 = vpop.f32.mrf.mxu0 }
 0x100   :  { %v239_v14 = vmul.f32 -1.442695, %v189_v12 }
 0x101   :  { %v161_v15 = vpop.f32.mrf.mxu0 }
 0x102   :  { %289 = vpow2.f32 %v239_v14  ;;  %v190_v16 = vadd.f32 %v238_v10, %v161_v15 }
 0x103   :  { %v269_v17 = vpop.f32.mrf.mxu0 }
 0x104   :  { %v240_v18 = vmul.f32 -1.442695, %v190_v16 }
 0x106   :  { %291 = vpow2.f32 %v240_v18 }
 0x10f   :  { %v290_v19 = vpop.eup %289 }
 0x110   :  { %v199_v20 = vadd.f32 1.0, %v290_v19 }
 0x112   :  { %293 = vrcp.f32 %v199_v20 }
 0x113   :  { %v292_v21 = vpop.eup %291 }
 0x114   :  { %v200_v22 = vadd.f32 1.0, %v292_v21 }
 0x116   :  { %295 = vrcp.f32 %v200_v22 }
 0x11f   :  { %v294_v24 = vpop.eup %293 }
 0x120   :  { %v205_v25 = vmul.f32 %v294_v24, %v189_v12 }
 0x122   :  { %v207_v27 = vadd.f32 %v205_v25, %v173_v23 }
 0x123   :  { %v296_v28 = vpop.eup %295 }
 0x124   :  { %209 = vst [vmem:[#allocation9] sm:$0xff] %v207_v27  ;;  %v206_v29 = vmul.f32 %v296_v28, %v190_v16 }
 0x126   :  { %v208_v30 = vadd.f32 %v206_v29, %v174_v26 }
 0x128   :  { %210 = vst [vmem:[#allocation9 + $0x8] sm:$0xff] %v208_v30 }
 0x129   :  { %348 = shalt.err (!%p345_p0)
}
 0x12a   :  { %s370_s26 = smov 128   ;;  %s371_s27 = smov 8  }
 0x12b   :  { %222 = dma.vmem_to_hbm [thread:$0]  %s217_s24, 256, %s407_s3, [#allocation6], %s370_s26, %s370_s26, %s371_s27  }
 0x12c   :  { %361 = dma.done.wait [#allocation6], 256  }
 0x12d   :  { %362 = vsyncadd [#allocation6], 4294967040 }
 0x12e   :  { %226 = vsyncpa [#allocation5], 1 }
 0x12f   :  { %227 = vsyncpa [#allocation8], 1 }
 0x130   :  { %228 = vsyncpa [#allocation6], 1 }

</bundles_post_ra>
